<compile_context>
chip_gen: v7x
topology: tpu7x:2x2x1
jax: 0.10.0
libtpu: 0.0.40
codegen_flags: <defaults>
</compile_context>

<pallas_src>
import functools

import jax
import jax.numpy as jnp
import numpy as np
from jax.experimental import pallas as pl
from jax.experimental.pallas import tpu as pltpu

NUM_HEADS = 8
SEQ_LEN = 4


# --------------------------- Pallas kernel ---------------------------------

def _fused_tree_attn_kernel(x_ref, wscore_ref, wv_ref, segt_ref, wp_ref,
                            bp_ref, edge_ref, o_ref, buf_ref, *, seq_len):
    """Full recursion for ONE batch row: (N, D) tokens -> (1, D) pooled feature.

    Per level (all shapes static, Python-unrolled):
      scores = x @ W_score        (n, H)   MXU, bf16 operands / f32 acc
      v      = x @ W_v^T          (n, D)   MXU
      p      = softmax over the seq_len tokens of each group (f32, EUP recip)
      ctx    = sum_s p * v        (g, D)
      x_next = ctx @ W_proj^T + b (g, D)
    """
    _, N, D = x_ref.shape
    H = wscore_ref.shape[1]
    mxu_dt = wscore_ref.dtype

    xcur = x_ref[0]                                   # (N, D) f32 tokens
    n = N
    while n > 1:                                      # static Python unroll
        mod = n % seq_len
        if mod != 0:
            # Append `edge` padding tokens via the VMEM scratch (static slices).
            pad = seq_len - mod
            buf_ref[pl.ds(0, n), :] = xcur
            buf_ref[pl.ds(n, pad), :] = jnp.broadcast_to(edge_ref[...], (pad, D))
            n = n + pad
            xcur = buf_ref[pl.ds(0, n), :]
        g = n // seq_len

        x_mxu = xcur.astype(mxu_dt)
        # Folded q / head-segment / scale projection: (n, D) @ (D, H).
        scores = jnp.dot(x_mxu, wscore_ref[...],
                         preferred_element_type=jnp.float32)          # (n, H)
        v = jnp.dot(x_mxu, wv_ref[...],
                    preferred_element_type=jnp.float32)               # (n, D)

        # Softmax over the seq_len tokens of each group (per head), f32.
        s3 = scores.reshape(g, seq_len, H)
        s3 = s3 - jnp.max(s3, axis=1, keepdims=True)
        p = jnp.exp(s3)
        p = p * pl.reciprocal(jnp.sum(p, axis=1, keepdims=True), approx=True)

        # Broadcast head weights back across head_dim and reduce over seq_len.
        p_full = jnp.dot(p.reshape(n, H).astype(mxu_dt), segt_ref[...],
                         preferred_element_type=jnp.float32)          # (n, D)
        ctx = (p_full * v).reshape(g, seq_len, D).sum(axis=1)         # (g, D)

        # Output projection (Linear with bias), f32 accumulation.
        xcur = jnp.dot(ctx.astype(mxu_dt), wp_ref[...],
                       preferred_element_type=jnp.float32) + bp_ref[...]
        n = g

    o_ref[0] = xcur.astype(o_ref.dtype)               # (1, D)


# --------------------------- wrapper (glue) ---------------------------------

def recurrent_attention(x, params, seq_len=SEQ_LEN, num_heads=NUM_HEADS,
                        mxu_dtype=jnp.bfloat16):
    """Pallas implementation of the recursive CLS-attention pooling: (B,N,D)->(B,D)."""
    B, N, D = x.shape
    hd = D // num_heads
    scale = hd ** (-0.5)

    wkv_t = params["w_kv"].T                                   # (D, 2D)
    wk_t, wv_t = wkv_t[:, :D], wkv_t[:, D:]                    # (D, D) each
    wp_t = params["w_proj"].T                                  # (D, D)
    bp = params["b_proj"].reshape(1, D)                        # (1, D)
    edge = params["edge"].reshape(1, D)                        # (1, D)

    # q projection of the shared CLS token is group-independent; fold it, the
    # 0/1 head-segment reduction and the scale into ONE (D, H) score matrix.
    qv = params["cls"].reshape(1, D) @ params["w_q"].T         # (1, D)
    seg = (jnp.arange(D)[:, None] // hd ==
           jnp.arange(num_heads)[None, :]).astype(jnp.float32)  # (D, H)
    w_score = ((wk_t * qv) @ seg) * scale                       # (D, H)
    seg_t = seg.T                                               # (H, D)

    # Scratch rows: enough for the widest (first) padded level.
    R = max(seq_len, ((N + seq_len - 1) // seq_len) * seq_len)

    kernel = functools.partial(_fused_tree_attn_kernel, seq_len=seq_len)
    out = pl.pallas_call(
        kernel,
        out_shape=jax.ShapeDtypeStruct((B, 1, D), jnp.float32),
        grid=(B,),
        in_specs=[
            pl.BlockSpec((1, N, D), lambda b: (b, 0, 0)),        # tokens of batch b
            pl.BlockSpec((D, num_heads), lambda b: (0, 0)),      # W_score (folded)
            pl.BlockSpec((D, D), lambda b: (0, 0)),              # W_v^T
            pl.BlockSpec((num_heads, D), lambda b: (0, 0)),      # head-segment^T
            pl.BlockSpec((D, D), lambda b: (0, 0)),              # W_proj^T
            pl.BlockSpec((1, D), lambda b: (0, 0)),              # b_proj
            pl.BlockSpec((1, D), lambda b: (0, 0)),              # edge token (f32)
        ],
        out_specs=pl.BlockSpec((1, 1, D), lambda b: (b, 0, 0)),
        scratch_shapes=[pltpu.VMEM((R, D), jnp.float32)],
        compiler_params=pltpu.CompilerParams(
            dimension_semantics=("parallel",)),
    )(x,
      w_score.astype(mxu_dtype),
      wv_t.astype(mxu_dtype),
      seg_t.astype(mxu_dtype),
      wp_t.astype(mxu_dtype),
      bp, edge)
    return out.reshape(B, D)


# --------------------------- pure-JAX reference ------------------------------

def _ref_attention(q, x, params, num_heads):
    B, M, C = q.shape
    N = x.shape[1]
    hd = C // num_heads
    scale = hd ** (-0.5)
    kv = x @ params["w_kv"].T                                       # (B, N, 2C)
    kv = kv.reshape(B, N, 2, num_heads, hd).transpose(2, 0, 3, 1, 4)
    k, v = kv[0], kv[1]                                             # (B, H, N, hd)
    qp = (q @ params["w_q"].T).reshape(B, M, 1, num_heads, hd)
    qp = qp.transpose(2, 0, 3, 1, 4)[0]                             # (B, H, M, hd)
    attn = jnp.einsum("bhmd,bhnd->bhmn", qp, k) * scale
    attn = jax.nn.softmax(attn, axis=-1)
    out = jnp.einsum("bhmn,bhnd->bhmd", attn, v)
    out = out.transpose(0, 2, 1, 3).reshape(B, M, C)
    return out @ params["w_proj"].T + params["b_proj"]


def ref_recurrent_attention(x, params, seq_len=SEQ_LEN, num_heads=NUM_HEADS):
    B, N, D = x.shape
    fx = x
    while fx.shape[1] > 1:
        mod = fx.shape[1] % seq_len
        if mod != 0:
            pad = seq_len - mod
            edge = jnp.broadcast_to(params["edge"].reshape(1, 1, D), (B, pad, D))
            fx = jnp.concatenate([fx, edge], axis=1)
        groups = fx.reshape(-1, seq_len, D)
        cls = jnp.broadcast_to(params["cls"], (groups.shape[0], 1, D))
        pooled = _ref_attention(cls, groups, params, num_heads)[:, 0, :]
        fx = pooled.reshape(B, -1, D)
    return fx.reshape(B, D)


# --------------------------- main --------------------------------------------

if __name__ == "__main__":
    # D=32, num_heads=8 -> head_dim=4; seq_len=4; N=10 exercises edge padding
    # at both recursion levels (10 -> pad to 12 -> 3 -> pad to 4 -> 1).
    B, N, D = 2, 10, 32

    key = jax.random.PRNGKey(0)
    k_x, k_kv, k_q, k_p, k_b, k_cls, k_edge = jax.random.split(key, 7)

    # Deterministic synthetic parameter init (shapes from the module __init__).
    params = {
        "w_kv":   0.1 * jax.random.normal(k_kv,   (2 * D, D), jnp.float32),
        "w_q":    0.1 * jax.random.normal(k_q,    (D, D),     jnp.float32),
        "w_proj": 0.1 * jax.random.normal(k_p,    (D, D),     jnp.float32),
        "b_proj": 0.1 * jax.random.normal(k_b,    (D,),       jnp.float32),
        "cls":    0.1 * jax.random.normal(k_cls,  (1, 1, D),  jnp.float32),
        "edge":   0.1 * jax.random.normal(k_edge, (1, 1, D),  jnp.float32),
    }

    x = jax.random.normal(k_x, (B, N, D), jnp.float32)

    out = jax.block_until_ready(recurrent_attention(x, params))
    ref = jax.block_until_ready(ref_recurrent_attention(x, params))

    assert out.shape == (B, D), out.shape
    np.testing.assert_allclose(np.asarray(out), np.asarray(ref),
                               rtol=2e-2, atol=2e-2)
    print("KERNEL_OK")
</pallas_src>

<mosaic_0001>
module attributes {stable_mosaic.version = 11 : i64} {
  func.func @_fused_tree_attn_kernel(%arg0: i32, %arg1: memref<1x10x32xf32, #tpu.memory_space<vmem>>, %arg2: memref<32x8xbf16, #tpu.memory_space<vmem>>, %arg3: memref<32x32xbf16, #tpu.memory_space<vmem>>, %arg4: memref<8x32xbf16, #tpu.memory_space<vmem>>, %arg5: memref<32x32xbf16, #tpu.memory_space<vmem>>, %arg6: memref<1x32xf32, #tpu.memory_space<vmem>>, %arg7: memref<1x32xf32, #tpu.memory_space<vmem>>, %arg8: memref<1x1x32xf32, #tpu.memory_space<vmem>>, %arg9: memref<12x32xf32, #tpu.memory_space<vmem>>) attributes {dimension_semantics = [#tpu.dimension_semantics<parallel>], iteration_bounds = array<i64: 2>, scalar_prefetch = 0 : i64, scratch_operands = 1 : i64, tpu.core_type = #tpu.core_type<tc>, window_params = [{transform_indices = @transform_0, window_bounds = array<i64: 1, 10, 32>}, {pipeline_mode = #tpu.pipeline_mode<synchronous>, transform_indices = @transform_1, window_bounds = array<i64: 32, 8>}, {pipeline_mode = #tpu.pipeline_mode<synchronous>, transform_indices = @transform_2, window_bounds = array<i64: 32, 32>}, {pipeline_mode = #tpu.pipeline_mode<synchronous>, transform_indices = @transform_3, window_bounds = array<i64: 8, 32>}, {pipeline_mode = #tpu.pipeline_mode<synchronous>, transform_indices = @transform_4, window_bounds = array<i64: 32, 32>}, {pipeline_mode = #tpu.pipeline_mode<synchronous>, transform_indices = @transform_5, window_bounds = array<i64: 1, 32>}, {pipeline_mode = #tpu.pipeline_mode<synchronous>, transform_indices = @transform_6, window_bounds = array<i64: 1, 32>}, {transform_indices = @transform_7, window_bounds = array<i64: 1, 1, 32>}]} {
    %c0 = arith.constant 0 : index
    %c0_0 = arith.constant 0 : index
    %c0_1 = arith.constant 0 : index
    %0 = vector.load %arg1[%c0, %c0_0, %c0_1] : memref<1x10x32xf32, #tpu.memory_space<vmem>>, vector<1x10x32xf32>
    %1 = vector.shape_cast %0 : vector<1x10x32xf32> to vector<10x32xf32>
    %c0_2 = arith.constant 0 : index
    %c0_3 = arith.constant 0 : index
    %2 = vector.load %arg9[%c0_2, %c0_3] : memref<12x32xf32, #tpu.memory_space<vmem>>, vector<10x32xf32>
    tpu.vector_store %arg9[%c0_2, %c0_3], %1 {strides = array<i32>} : memref<12x32xf32, #tpu.memory_space<vmem>>, vector<10x32xf32>,
    %c0_4 = arith.constant 0 : index
    %c0_5 = arith.constant 0 : index
    %3 = vector.load %arg7[%c0_4, %c0_5] : memref<1x32xf32, #tpu.memory_space<vmem>>, vector<1x32xf32>
    %4 = vector.shape_cast %3 : vector<1x32xf32> to vector<1x32xf32>
    %5 = vector.broadcast %4 : vector<1x32xf32> to vector<2x32xf32>
    %c10 = arith.constant 10 : index
    %c0_6 = arith.constant 0 : index
    %6 = vector.load %arg9[%c10, %c0_6] : memref<12x32xf32, #tpu.memory_space<vmem>>, vector<2x32xf32>
    tpu.vector_store %arg9[%c10, %c0_6], %5 {strides = array<i32>} : memref<12x32xf32, #tpu.memory_space<vmem>>, vector<2x32xf32>,
    %c0_7 = arith.constant 0 : index
    %c0_8 = arith.constant 0 : index
    %7 = vector.load %arg9[%c0_7, %c0_8] : memref<12x32xf32, #tpu.memory_space<vmem>>, vector<12x32xf32>
    %8 = arith.truncf %7 : vector<12x32xf32> to vector<12x32xbf16>
    %c0_9 = arith.constant 0 : index
    %c0_10 = arith.constant 0 : index
    %9 = vector.load %arg2[%c0_9, %c0_10] : memref<32x8xbf16, #tpu.memory_space<vmem>>, vector<32x8xbf16>
    %cst = arith.constant dense<0.000000e+00> : vector<12x8xf32>
    %10 = tpu.matmul %8, %9, %cst {dimension_numbers = #tpu.dot_dimension_numbers<[1], [0], [0], [1], [0, 0, 1, 1], [], []>} : vector<12x32xbf16>, vector<32x8xbf16>, vector<12x8xf32> -> vector<12x8xf32>
    %c0_11 = arith.constant 0 : index
    %c0_12 = arith.constant 0 : index
    %11 = vector.load %arg3[%c0_11, %c0_12] : memref<32x32xbf16, #tpu.memory_space<vmem>>, vector<32x32xbf16>
    %cst_13 = arith.constant dense<0.000000e+00> : vector<12x32xf32>
    %12 = tpu.matmul %8, %11, %cst_13 {dimension_numbers = #tpu.dot_dimension_numbers<[1], [0], [0], [1], [0, 0, 1, 1], [], []>} : vector<12x32xbf16>, vector<32x32xbf16>, vector<12x32xf32> -> vector<12x32xf32>
    %13 = vector.shape_cast %10 : vector<12x8xf32> to vector<3x4x8xf32>
    %cst_14 = arith.constant dense<0xFF800000> : vector<3x8xf32>
    %14 = vector.multi_reduction <maximumf>, %13, %cst_14 [1] : vector<3x4x8xf32> to vector<3x8xf32>
    %15 = vector.shape_cast %14 : vector<3x8xf32> to vector<3x1x8xf32>
    %16 = vector.broadcast %15 : vector<3x1x8xf32> to vector<3x4x8xf32>
    %17 = arith.subf %13, %16 : vector<3x4x8xf32>
    %18 = math.exp %17 : vector<3x4x8xf32>
    %cst_15 = arith.constant dense<0.000000e+00> : vector<3x8xf32>
    %19 = vector.multi_reduction <add>, %18, %cst_15 [1] : vector<3x4x8xf32> to vector<3x8xf32>
    %20 = vector.shape_cast %19 : vector<3x8xf32> to vector<3x1x8xf32>
    %21 = tpu.reciprocal %20 {approx = true} : vector<3x1x8xf32> -> vector<3x1x8xf32>
    %22 = vector.broadcast %21 : vector<3x1x8xf32> to vector<3x4x8xf32>
    %23 = arith.mulf %18, %22 : vector<3x4x8xf32>
    %24 = vector.shape_cast %23 : vector<3x4x8xf32> to vector<12x8xf32>
    %25 = arith.truncf %24 : vector<12x8xf32> to vector<12x8xbf16>
    %c0_16 = arith.constant 0 : index
    %c0_17 = arith.constant 0 : index
    %26 = vector.load %arg4[%c0_16, %c0_17] : memref<8x32xbf16, #tpu.memory_space<vmem>>, vector<8x32xbf16>
    %cst_18 = arith.constant dense<0.000000e+00> : vector<12x32xf32>
    %27 = tpu.matmul %25, %26, %cst_18 {dimension_numbers = #tpu.dot_dimension_numbers<[1], [0], [0], [1], [0, 0, 1, 1], [], []>} : vector<12x8xbf16>, vector<8x32xbf16>, vector<12x32xf32> -> vector<12x32xf32>
    %28 = arith.mulf %27, %12 : vector<12x32xf32>
    %29 = vector.shape_cast %28 : vector<12x32xf32> to vector<3x4x32xf32>
    %cst_19 = arith.constant dense<0.000000e+00> : vector<3x32xf32>
    %30 = vector.multi_reduction <add>, %29, %cst_19 [1] : vector<3x4x32xf32> to vector<3x32xf32>
    %31 = arith.truncf %30 : vector<3x32xf32> to vector<3x32xbf16>
    %c0_20 = arith.constant 0 : index
    %c0_21 = arith.constant 0 : index
    %32 = vector.load %arg5[%c0_20, %c0_21] : memref<32x32xbf16, #tpu.memory_space<vmem>>, vector<32x32xbf16>
    %cst_22 = arith.constant dense<0.000000e+00> : vector<3x32xf32>
    %33 = tpu.matmul %31, %32, %cst_22 {dimension_numbers = #tpu.dot_dimension_numbers<[1], [0], [0], [1], [0, 0, 1, 1], [], []>} : vector<3x32xbf16>, vector<32x32xbf16>, vector<3x32xf32> -> vector<3x32xf32>
    %c0_23 = arith.constant 0 : index
    %c0_24 = arith.constant 0 : index
    %34 = vector.load %arg6[%c0_23, %c0_24] : memref<1x32xf32, #tpu.memory_space<vmem>>, vector<1x32xf32>
    %35 = vector.broadcast %34 : vector<1x32xf32> to vector<3x32xf32>
    %36 = arith.addf %33, %35 : vector<3x32xf32>
    %c0_25 = arith.constant 0 : index
    %c0_26 = arith.constant 0 : index
    %37 = vector.load %arg9[%c0_25, %c0_26] : memref<12x32xf32, #tpu.memory_space<vmem>>, vector<3x32xf32>
    tpu.vector_store %arg9[%c0_25, %c0_26], %36 {strides = array<i32>} : memref<12x32xf32, #tpu.memory_space<vmem>>, vector<3x32xf32>,
    %c0_27 = arith.constant 0 : index
    %c0_28 = arith.constant 0 : index
    %38 = vector.load %arg7[%c0_27, %c0_28] : memref<1x32xf32, #tpu.memory_space<vmem>>, vector<1x32xf32>
    %c3 = arith.constant 3 : index
    %c0_29 = arith.constant 0 : index
    %39 = vector.load %arg9[%c3, %c0_29] : memref<12x32xf32, #tpu.memory_space<vmem>>, vector<1x32xf32>
    tpu.vector_store %arg9[%c3, %c0_29], %38 {strides = array<i32>} : memref<12x32xf32, #tpu.memory_space<vmem>>, vector<1x32xf32>,
    %c0_30 = arith.constant 0 : index
    %c0_31 = arith.constant 0 : index
    %40 = vector.load %arg9[%c0_30, %c0_31] : memref<12x32xf32, #tpu.memory_space<vmem>>, vector<4x32xf32>
    %41 = arith.truncf %40 : vector<4x32xf32> to vector<4x32xbf16>
    %c0_32 = arith.constant 0 : index
    %c0_33 = arith.constant 0 : index
    %42 = vector.load %arg2[%c0_32, %c0_33] : memref<32x8xbf16, #tpu.memory_space<vmem>>, vector<32x8xbf16>
    %cst_34 = arith.constant dense<0.000000e+00> : vector<4x8xf32>
    %43 = tpu.matmul %41, %42, %cst_34 {dimension_numbers = #tpu.dot_dimension_numbers<[1], [0], [0], [1], [0, 0, 1, 1], [], []>} : vector<4x32xbf16>, vector<32x8xbf16>, vector<4x8xf32> -> vector<4x8xf32>
    %c0_35 = arith.constant 0 : index
    %c0_36 = arith.constant 0 : index
    %44 = vector.load %arg3[%c0_35, %c0_36] : memref<32x32xbf16, #tpu.memory_space<vmem>>, vector<32x32xbf16>
    %cst_37 = arith.constant dense<0.000000e+00> : vector<4x32xf32>
    %45 = tpu.matmul %41, %44, %cst_37 {dimension_numbers = #tpu.dot_dimension_numbers<[1], [0], [0], [1], [0, 0, 1, 1], [], []>} : vector<4x32xbf16>, vector<32x32xbf16>, vector<4x32xf32> -> vector<4x32xf32>
    %46 = vector.shape_cast %43 : vector<4x8xf32> to vector<1x4x8xf32>
    %cst_38 = arith.constant dense<0xFF800000> : vector<1x8xf32>
    %47 = vector.multi_reduction <maximumf>, %46, %cst_38 [1] : vector<1x4x8xf32> to vector<1x8xf32>
    %48 = vector.shape_cast %47 : vector<1x8xf32> to vector<1x1x8xf32>
    %49 = vector.broadcast %48 : vector<1x1x8xf32> to vector<1x4x8xf32>
    %50 = arith.subf %46, %49 : vector<1x4x8xf32>
    %51 = math.exp %50 : vector<1x4x8xf32>
    %cst_39 = arith.constant dense<0.000000e+00> : vector<1x8xf32>
    %52 = vector.multi_reduction <add>, %51, %cst_39 [1] : vector<1x4x8xf32> to vector<1x8xf32>
    %53 = vector.shape_cast %52 : vector<1x8xf32> to vector<1x1x8xf32>
    %54 = tpu.reciprocal %53 {approx = true} : vector<1x1x8xf32> -> vector<1x1x8xf32>
    %55 = vector.broadcast %54 : vector<1x1x8xf32> to vector<1x4x8xf32>
    %56 = arith.mulf %51, %55 : vector<1x4x8xf32>
    %57 = vector.shape_cast %56 : vector<1x4x8xf32> to vector<4x8xf32>
    %58 = arith.truncf %57 : vector<4x8xf32> to vector<4x8xbf16>
    %c0_40 = arith.constant 0 : index
    %c0_41 = arith.constant 0 : index
    %59 = vector.load %arg4[%c0_40, %c0_41] : memref<8x32xbf16, #tpu.memory_space<vmem>>, vector<8x32xbf16>
    %cst_42 = arith.constant dense<0.000000e+00> : vector<4x32xf32>
    %60 = tpu.matmul %58, %59, %cst_42 {dimension_numbers = #tpu.dot_dimension_numbers<[1], [0], [0], [1], [0, 0, 1, 1], [], []>} : vector<4x8xbf16>, vector<8x32xbf16>, vector<4x32xf32> -> vector<4x32xf32>
    %61 = arith.mulf %60, %45 : vector<4x32xf32>
    %62 = vector.shape_cast %61 : vector<4x32xf32> to vector<1x4x32xf32>
    %cst_43 = arith.constant dense<0.000000e+00> : vector<1x32xf32>
    %63 = vector.multi_reduction <add>, %62, %cst_43 [1] : vector<1x4x32xf32> to vector<1x32xf32>
    %64 = arith.truncf %63 : vector<1x32xf32> to vector<1x32xbf16>
    %c0_44 = arith.constant 0 : index
    %c0_45 = arith.constant 0 : index
    %65 = vector.load %arg5[%c0_44, %c0_45] : memref<32x32xbf16, #tpu.memory_space<vmem>>, vector<32x32xbf16>
    %cst_46 = arith.constant dense<0.000000e+00> : vector<1x32xf32>
    %66 = tpu.matmul %64, %65, %cst_46 {dimension_numbers = #tpu.dot_dimension_numbers<[1], [0], [0], [1], [0, 0, 1, 1], [], []>} : vector<1x32xbf16>, vector<32x32xbf16>, vector<1x32xf32> -> vector<1x32xf32>
    %c0_47 = arith.constant 0 : index
    %c0_48 = arith.constant 0 : index
    %67 = vector.load %arg6[%c0_47, %c0_48] : memref<1x32xf32, #tpu.memory_space<vmem>>, vector<1x32xf32>
    %68 = arith.addf %66, %67 : vector<1x32xf32>
    %c0_49 = arith.constant 0 : index
    %c0_50 = arith.constant 0 : index
    %c0_51 = arith.constant 0 : index
    %69 = vector.load %arg8[%c0_49, %c0_50, %c0_51] : memref<1x1x32xf32, #tpu.memory_space<vmem>>, vector<1x1x32xf32>
    %70 = vector.shape_cast %69 : vector<1x1x32xf32> to vector<1x32xf32>
    %71 = vector.shape_cast %68 : vector<1x32xf32> to vector<1x1x32xf32>
    tpu.vector_store %arg8[%c0_49, %c0_50, %c0_51], %71 {strides = array<i32>} : memref<1x1x32xf32, #tpu.memory_space<vmem>>, vector<1x1x32xf32>,
    return
  }
  func.func @transform_0(%arg0: i32) -> (i32, i32, i32) {
    %c0_i32 = arith.constant 0 : i32
    %c0_i32_0 = arith.constant 0 : i32
    %c0_i32_1 = arith.constant 0 : i32
    return %arg0, %c0_i32, %c0_i32_0 : i32, i32, i32
  }
  func.func @transform_1(%arg0: i32) -> (i32, i32) {
    %c0_i32 = arith.constant 0 : i32
    %c0_i32_0 = arith.constant 0 : i32
    %c0_i32_1 = arith.constant 0 : i32
    return %c0_i32, %c0_i32_0 : i32, i32
  }
  func.func @transform_2(%arg0: i32) -> (i32, i32) {
    %c0_i32 = arith.constant 0 : i32
    %c0_i32_0 = arith.constant 0 : i32
    %c0_i32_1 = arith.constant 0 : i32
    return %c0_i32, %c0_i32_0 : i32, i32
  }
  func.func @transform_3(%arg0: i32) -> (i32, i32) {
    %c0_i32 = arith.constant 0 : i32
    %c0_i32_0 = arith.constant 0 : i32
    %c0_i32_1 = arith.constant 0 : i32
    return %c0_i32, %c0_i32_0 : i32, i32
  }
  func.func @transform_4(%arg0: i32) -> (i32, i32) {
    %c0_i32 = arith.constant 0 : i32
    %c0_i32_0 = arith.constant 0 : i32
    %c0_i32_1 = arith.constant 0 : i32
    return %c0_i32, %c0_i32_0 : i32, i32
  }
  func.func @transform_5(%arg0: i32) -> (i32, i32) {
    %c0_i32 = arith.constant 0 : i32
    %c0_i32_0 = arith.constant 0 : i32
    %c0_i32_1 = arith.constant 0 : i32
    return %c0_i32, %c0_i32_0 : i32, i32
  }
  func.func @transform_6(%arg0: i32) -> (i32, i32) {
    %c0_i32 = arith.constant 0 : i32
    %c0_i32_0 = arith.constant 0 : i32
    %c0_i32_1 = arith.constant 0 : i32
    return %c0_i32, %c0_i32_0 : i32, i32
  }
  func.func @transform_7(%arg0: i32) -> (i32, i32, i32) {
    %c0_i32 = arith.constant 0 : i32
    %c0_i32_0 = arith.constant 0 : i32
    %c0_i32_1 = arith.constant 0 : i32
    return %arg0, %c0_i32, %c0_i32_0 : i32, i32, i32
  }
}

</mosaic_0001>

<bundles_post_ra>
// kernel: tpu_custom_call.1
= control target key start
LH: loop header
LB: loop body
LE: loop exit
PB: predicated region body
PF: predicated region fallthrough
CT: control target
= control target key end

     0   :  { %12 = vsyncpa [#allocation4], 0  ;;  %s1460_s0 = inlined_call_operand.vmem [shape: f32[2,10,32], index: 0, kind: input, shape index: {}]   ;;  %s1461_s1 = inlined_call_operand.vmem [shape: bf16[32,8], index: 1, kind: input, shape index: {}]   ;;  %s1462_s2 = inlined_call_operand.vmem [shape: bf16[32,32], index: 2, kind: input, shape index: {}]   ;;  %s1463_s3 = inlined_call_operand.vmem [shape: bf16[8,32], index: 3, kind: input, shape index: {}]   ;;  %s1464_s4 = inlined_call_operand.vmem [shape: bf16[32,32], index: 4, kind: input, shape index: {}]   ;;  %s1465_s5 = inlined_call_operand.vmem [shape: f32[1,32], index: 5, kind: input, shape index: {}]   ;;  %s1466_s6 = inlined_call_operand.vmem [shape: f32[1,32], index: 6, kind: input, shape index: {}]   ;;  %s1467_s7 = inlined_call_operand.hbm [shape: f32[2,1,32], index: 7, kind: output, shape index: {}]  }
   0x1   :  { %14 = vsyncpa [#allocation4 + $0x1], 0  ;;  %s1251_s24 = smov 0   ;;  %s1253_s25 = smov 0  }
   0x2   :  { %s1255_s26 = smov 0   ;;  %s1257_s27 = smov 0  }
   0x3 LB: > { %s1272_s28 = sadd.s32 4294967295, %s1206_s27   ;;  %s961_s29 = sadd.s32 4294967294, %s1206_s27   ;;  %s1206_s27 = sphi %s1257_s27, %s1473_s27   ;;  %s1202_s26 = sphi %s1255_s26, %s1472_s26   ;;  %s1198_s25 = sphi %s1253_s25, %s1471_s25   ;;  %s1194_s24 = sphi %s1251_s24, %s1470_s24  }
   0x4   : > { %s1276_s30 = sadd.s32 1, %s1206_s27   ;;  %s179_s8 = sadd.s32 1, %s1202_s26 }
   0x5   : > { %s176_s9 = ssub.s32 %s1206_s27, %s1276_s30  ;;  %p189_p0 = scmp.ne.s32.totalorder %s1202_s26, %s1198_s25 }
   0x6   : > { %p177_p1 = scmp.eq.s32.totalorder %s176_s9, 0  ;;  %p190_p2 = scmp.eq.s32.totalorder %s1272_s28, 1 }
   0x7   : > { %p195_p3 = scmp.ne.s32.totalorder %s1198_s25, %s1194_s24  ;;  %p196_p4 = scmp.eq.s32.totalorder %s961_s29, 1 }
   0x8   : > { %s1287_s10 = scalar_select %p177_p1, %s1202_s26, %s179_s8  }
   0x9   : > { %p1289_p5 = por %p190_p2, %p189_p0  ;;  %p1293_p6 = por %p196_p4, %p195_p3 }
   0xa   : > { %p964_p7 = scmp.ge.s32.totalorder %s1206_s27, 1  ;;  %p240_p8 = scmp.lt.s32.totalorder %s1206_s27, 3 }
   0xc   : > { %p241_p9 = pnand %p964_p7, %p240_p8 }
   0xd   : > { %v1116_v0 = vld [vmem:[%s1461_s1] sm:$0xff] (!%p241_p9)   ;;  %v1208_v1 = vmov (!%p241_p9), 0.0   ;;  %v1117_v2 = vld [vmem:[%s1461_s1 + $0x8] sm:$0xff] (!%p241_p9)   ;;  %vm1209_vm0 = vmmov (!%p241_p9), 0   ;;  %p271_p10 = scmp.lt.s32.totalorder (!%p241_p9), %s1272_s28, 1  ;;  %vm281_vm1 = vcmask (!%p241_p9), 254976  }
   0xe   : > { %244 = sbr.rel (%p241_p9) target bundleno = 1495 (0x5d7), region = 48  ;;  %1015 = vmatprep.subr.bf16.mxu0 (!%p241_p9), %v1208_v1  ;;  %1023 = vmatprep.subr.bf16.mxu1 (!%p241_p9), %v1208_v1  ;;  %v967_v3 = vld [vmem:[%s1466_s6] ss:$0 sm:$0xff] (!%p241_p9)  ;;  %vm279_vm2 = vcmask (!%p241_p9), 261120   ;;  %vm637_vm3 = vcmask (!%p241_p9), 253952   ;;  %v1119_v11 = vld [vmem:[%s1462_s2 + $0x8] sm:$0xff] (!%p241_p9)  }
   0xf   : > { %1016 = vmatpush3.bf16.msra.mxu0 (!%p241_p9), %v1116_v0  ;;  %1019 = vmatprep.mubr.msk.bf16.mxu0 (!%p241_p9), %vm1209_vm0, %v1208_v1  ;;  %290 = vst.msk [vmem:[#allocation2 + $0xa] sm:$0x3] (!%p241_p9), %vm281_vm1, %v967_v3  ;;  %v636_v6 = vld [vmem:[%s1466_s6] sm:$0x1] (!%p241_p9)  ;;  %vm482_vm4 = vcmask (!%p241_p9), 1043456   ;;  %vm414_vm5 = vcmask (!%p241_p9), 60416  }
  0x10   : > { %1017 = vmatprep.subr.bf16.mxu0 (!%p241_p9), %v1208_v1  ;;  %1027 = vmatprep.mubr.msk.bf16.mxu1 (!%p241_p9), %vm1209_vm0, %v1208_v1  ;;  %v1118_v10 = vld [vmem:[%s1462_s2] sm:$0xff] (!%p241_p9)   ;;  %vm478_vm6 = vcmask (!%p241_p9), 64512   ;;  %vm532_vm7 = vcmask (!%p241_p9), 257024   ;;  %vm574_vm8 = vcmask (!%p241_p9), 1041409   ;;  %vm576_vm9 = vcmask (!%p241_p9), 1042434   ;;  %s269_s29 = sand.u32 (!%p241_p9), 1, %s1198_s25  }
  0x11   : > { %1024 = vmatpush3.bf16.msra.mxu1 (!%p241_p9), %v1118_v10  ;;  %v477_v12 = vld [vmem:[%s1463_s3] sm:$0xf] (!%p241_p9)  ;;  %vm634_vm10 = vcmask (!%p241_p9), 256000   ;;  %s989_s13 = sshll.u32 (!%p241_p9), %s1272_s28, 4  ;;  %s270_s14 = scalar_lea.vmem (!%p241_p9), [#allocation3], %s269_s29 }
  0x12   : > { %1025 = vmatprep.subr.bf16.mxu1 (!%p241_p9), %v1208_v1  ;;  %v484_v13 = vsel (!%p241_p9), %vm482_vm4, %v477_v12, 0  ;;  %s906_s15 = sshll.u32 (!%p241_p9), %s270_s14, 4  ;;  %s1417_s18 = scalar_lea.hbm (!%p241_p9), %s1467_s7, %s989_s13  ;;  %s1419_s15 = int_to_ptr.vmem [resolvable:$true] %s906_s15 }
  0x13   : > { %1018 = vmatpush3.bf16.msra.mxu0 (!%p241_p9), %v1117_v2 }
  0x14   : > { %1031 = vmatprep.subr.bf16.mxu0 (!%p241_p9), %v1208_v1 }
  0x15   : > { %s272_s19 = scalar_select %p271_p10, %s1272_s28, 1  ;;  %1026 = vmatpush3.bf16.msra.mxu1 %v1119_v11 }
  0x16   : > { %1037 = vmatprep.subr.bf16.mxu1 %v1208_v1  ;;  %s894_s28 = scalar_lea.sflag [#allocation4], %s269_s29 }
  0x17   : > { %s992_s20 = sshll.u32 %s272_s19, 4  ;;  %s1144_s19 = scalar_lea.vmem %s1419_s15, 16 }
  0x18   : > { %s275_s23 = scalar_lea.vmem %s1460_s0, %s992_s20  ;;  %p1145_p11 = scmp.ne.s32.totalorder %s1419_s15, %s1144_s19 }
  0x19   : > { %v277_v4 = vld [vmem:[%s275_s23] sm:$0xff]  ;;  %v278_v5 = vld [vmem:[%s275_s23 + $0x8] sm:$0x3]  ;;  %s1210_s20 = smov [#allocation3]  }
  0x1a   : > { %280 = vst.msk [vmem:[#allocation2] sm:$0xff] %vm279_vm2, %v277_v4  ;;  %p1146_p12 = pnand %p1145_p11, %p1289_p5  ;;  %s1148_s21 = sshll.u32 %s1210_s20, 4  ;;  %s1149_s21 = int_to_ptr.vmem [resolvable:$false] %s1148_s21 }
  0x1b   : > { %282 = vst.msk [vmem:[#allocation2 + $0x8] sm:$0x3] %vm281_vm1, %v278_v5  ;;  %s1150_s22 = scalar_lea.vmem %s1149_s21, 32  ;;  %p1151_p0 = scmp.lt.s32.totalorder %s1419_s15, %s1149_s21 }
  0x1c   : > { %p1147_p13 = pneg %p1146_p12  ;;  %p1152_p1 = scmp.lt.s32.totalorder %s1150_s22, %s1144_s19 }
  0x1e   : > { %p1153_p2 = por %p1152_p1, %p1151_p0 }
  0x20   : > { %p1154_p3 = pnand %p1153_p2, %p1147_p13 }
  0x21   : > { %v291_v7 = vld [vmem:[#allocation2] sm:$0xff] }
  0x22   : > { %v292_v8 = vld [vmem:[#allocation2 + $0x8] sm:$0xf]  ;;  %638 = vst.msk [vmem:[#allocation2 + $0x3] sm:$0x1] %vm637_vm3, %v636_v6 }
  0x23   : > { %v293_v9 = vpack.c.bf16 %v292_v8, %v291_v7 }
  0x25   : > { %1020 = vmatmul.mubr.msk.bf16.vlgmr.msra.gmra.mrb[0].mxu0 %vm279_vm2, %v293_v9  ;;  %1028 = vmatmul.mubr.msk.bf16.vlgmr.msra.gmra.mrb[0].mxu1 %vm279_vm2, %v293_v9 }
  0x26   : > { %1033 = vmatprep.mubr.msk.bf16.mxu0 %vm1209_vm0, %v1208_v1  ;;  %1032 = vmatpush3.bf16.msra.mxu0 %v484_v13 }
  0x27   : > { %1045 = vmatprep.subr.bf16.mxu0 %v1208_v1  ;;  %1041 = vmatprep.mubr.msk.bf16.mxu1 %vm1209_vm0, %v1208_v1 }
  0xf8   : > { %v347_v14 = vpop.f32.mrb[0].mxu0 }
  0xf9   : > { %v412_v15 = vcombine.high %v347_v14, %v347_v14  ;;  %v415_v16 = vsel %vm414_vm5, %v347_v14, -inf  ;;  %v1021_v17 = vpop.f32.mrb[1].mxu0 }
  0xfa   : > { %v416_v18 = vrot.slane %v415_v16, 4  ;;  %v350_v19 = vpop.f32.mrb[2].mxu0 }
  0xfb   : > { %v422_v20 = vsel %vm414_vm5, %v412_v15, -inf  ;;  %v429_v21 = vsel %vm414_vm5, %v350_v19, -inf  ;;  %v1022_v22 = vpop.f32.mrb[3].mxu0 }
  0xfc   : > { %v417_v23 = vmax.f32 %v415_v16, %v416_v18  ;;  %v423_v24 = vrot.slane %v422_v20, 4  ;;  %v430_v25 = vrot.slane %v429_v21, 4 }
  0xfe   : > { %v418_v26 = vrot.slane %v417_v23, 2  ;;  %v424_v27 = vmax.f32 %v422_v20, %v423_v24  ;;  %v431_v28 = vmax.f32 %v429_v21, %v430_v25  ;;  %v1121_v20 = vld [vmem:[%s1464_s4 + $0x8] sm:$0xff]  }
 0x100   : > { %v419_v29 = vmax.f32 %v417_v23, %v418_v26  ;;  %v425_v30 = vrot.slane %v424_v27, 2  ;;  %v432_v31 = vrot.slane %v431_v28, 2 }
 0x102   : > { %v420_v32 = vrot.slane %v419_v29, 1  ;;  %v426_v33 = vmax.f32 %v424_v27, %v425_v30  ;;  %v433_v34 = vmax.f32 %v431_v28, %v432_v31 }
 0x104   : > { %v421_v35 = vmax.f32 %v419_v29, %v420_v32  ;;  %v427_v36 = vrot.slane %v426_v33, 1  ;;  %v434_v37 = vrot.slane %v433_v34, 1 }
 0x106   : > { %v428_v38 = vmax.f32 %v426_v33, %v427_v36  ;;  %v436_v39 = vsub.f32 %v347_v14, %v421_v35  ;;  %v435_v40 = vmax.f32 %v433_v34, %v434_v37 }
 0x108   : > { %v437_v41 = vsub.f32 %v412_v15, %v428_v38  ;;  %v439_v42 = vmul.f32 1.442695, %v436_v39  ;;  %v438_v43 = vsub.f32 %v350_v19, %v435_v40  ;;  %v404_v15 = vpop.f32.mrb[0].mxu1  ;;  %v1120_v19 = vld [vmem:[%s1464_s4] sm:$0xff]  }
 0x109   : > { %v1029_v16 = vpop.f32.mrb[1].mxu1  ;;  %1038 = vmatpush3.bf16.msra.mxu1 %v1120_v19 }
 0x10a   : > { %1128 = vpow2.f32 %v439_v42  ;;  %v441_v44 = vmul.f32 1.442695, %v437_v41  ;;  %v443_v45 = vmul.f32 1.442695, %v438_v43  ;;  %v407_v17 = vpop.f32.mrb[2].mxu1  ;;  %1039 = vmatprep.subr.bf16.mxu1 %v1208_v1 }
 0x10b   : > { %v1030_v18 = vpop.f32.mrb[3].mxu1 }
 0x10c   : > { %1130 = vpow2.f32 %v441_v44 }
 0x10d   : > { %1132 = vpow2.f32 %v443_v45  ;;  %1040 = vmatpush3.bf16.msra.mxu1 %v1121_v20 }
 0x10e   : > { %1053 = vmatprep.subr.bf16.mxu1 %v1208_v1 }
 0x114   : > { %v1129_v46 = vpop.eup %1128 }
 0x115   : > { %v445_v47 = vsel %vm414_vm5, %v1129_v46, 0.0 }
 0x116   : > { %v1131_v48 = vpop.eup %1130  ;;  %v446_v49 = vrot.slane %v445_v47, 4 }
 0x117   : > { %v1133_v50 = vpop.eup %1132  ;;  %v452_v51 = vsel %vm414_vm5, %v1131_v48, 0.0 }
 0x118   : > { %v447_v52 = vadd.f32 %v446_v49, %v445_v47  ;;  %v453_v53 = vrot.slane %v452_v51, 4  ;;  %v459_v54 = vsel %vm414_vm5, %v1133_v50, 0.0 }
 0x119   : > { %v460_v55 = vrot.slane %v459_v54, 4 }
 0x11a   : > { %v448_v56 = vrot.slane %v447_v52, 2  ;;  %v454_v57 = vadd.f32 %v453_v53, %v452_v51 }
 0x11b   : > { %v461_v58 = vadd.f32 %v460_v55, %v459_v54 }
 0x11c   : > { %v449_v59 = vadd.f32 %v448_v56, %v447_v52  ;;  %v455_v60 = vrot.slane %v454_v57, 2 }
 0x11d   : > { %v462_v61 = vrot.slane %v461_v58, 2 }
 0x11e   : > { %v450_v62 = vrot.slane %v449_v59, 1  ;;  %v456_v63 = vadd.f32 %v455_v60, %v454_v57  ;;  %v1124_v60 = vld [vmem:[%s1461_s1 + $0x8] sm:$0xff]  }
 0x11f   : > { %v463_v0 = vadd.f32 %v462_v61, %v461_v58  ;;  %v1122_v58 = vld [vmem:[%s1461_s1] sm:$0xff]   ;;  %v1125_v61 = vld [vmem:[%s1462_s2 + $0x8] sm:$0xff]  }
 0x120   : > { %v451_v2 = vadd.f32 %v450_v62, %v449_v59  ;;  %v457_v3 = vrot.slane %v456_v63, 1  ;;  %v1123_v59 = vld [vmem:[%s1462_s2] sm:$0xff]  }
 0x121   : > { %v464_v4 = vrot.slane %v463_v0, 1  ;;  %v975_v62 = vld [vmem:[%s1465_s5] ss:$0 sm:$0xff] }
 0x122   : > { %v458_v5 = vadd.f32 %v457_v3, %v456_v63  ;;  %1134 = vrcp.f32 %v451_v2 }
 0x123   : > { %v465_v6 = vadd.f32 %v464_v4, %v463_v0 }
 0x124   : > { %1136 = vrcp.f32 %v458_v5 }
 0x125   : > { %1138 = vrcp.f32 %v465_v6 }
 0x12c   : > { %v1135_v7 = vpop.eup %1134 }
 0x12d   : > { %v469_v10 = vmul.f32 %v1135_v7, %v1129_v46  ;;  %v776_v7 = vld [vmem:[%s1463_s3] sm:$0xf] }
 0x12e   : > { %v1137_v8 = vpop.eup %1136 }
 0x12f   : > { %v1139_v9 = vpop.eup %1138  ;;  %v470_v11 = vmul.f32 %v1137_v8, %v1131_v48  ;;  %v781_v8 = vsel %vm482_vm4, %v776_v7, 0 }
 0x130   : > { %v471_v12 = vmul.f32 %v1139_v9, %v1133_v50 }
 0x131   : > { %v474_v13 = vcombine.low %v469_v10, %v470_v11 }
 0x133   : > { %v476_v14 = vpack.c.bf16 %v471_v12, %v474_v13 }
 0x135   : > { %1034 = vmatmul.mubr.msk.bf16.vlgmr.msra.gmra.mrb[4].mxu0 %vm478_vm6, %v476_v14 }
 0x136   : > { %1049 = vmatprep.mubr.msk.bf16.mxu0 %vm1209_vm0, %v1208_v1  ;;  %1046 = vmatpush3.bf16.msra.mxu0 %v1122_v58 }
 0x137   : > { %1047 = vmatprep.subr.bf16.mxu0 %v1208_v1 }
 0x13a   : > { %1048 = vmatpush3.bf16.msra.mxu0 %v1124_v60 }
 0x13b   : > { %1061 = vmatprep.subr.bf16.mxu0 %v1208_v1 }
 0x208   : > { %v520_v21 = vpop.f32.mrb[4].mxu0 }
 0x209   : > { %v527_v22 = vmul.f32 %v520_v21, %v404_v15  ;;  %v1035_v23 = vpop.f32.mrb[5].mxu0 }
 0x20a   : > { %v523_v24 = vpop.f32.mrb[6].mxu0 }
 0x20b   : > { %v530_v25 = vcombine.high %v527_v22, %v527_v22  ;;  %v533_v26 = vsel %vm532_vm7, %v527_v22, 0.0  ;;  %v528_v27 = vmul.f32 %v523_v24, %v407_v17  ;;  %v1036_v28 = vpop.f32.mrb[7].mxu0 }
 0x20c   : > { %v534_v29 = vrot.slane %v533_v26, 4 }
 0x20d   : > { %v540_v30 = vsel %vm532_vm7, %v530_v25, 0.0  ;;  %v547_v31 = vsel %vm532_vm7, %v528_v27, 0.0 }
 0x20e   : > { %v535_v32 = vadd.f32 %v534_v29, %v533_v26  ;;  %v541_v33 = vrot.slane %v540_v30, 4  ;;  %v548_v34 = vrot.slane %v547_v31, 4 }
 0x210   : > { %v536_v35 = vrot.slane %v535_v32, 2  ;;  %v542_v36 = vadd.f32 %v541_v33, %v540_v30  ;;  %v549_v37 = vadd.f32 %v548_v34, %v547_v31 }
 0x212   : > { %v537_v38 = vadd.f32 %v536_v35, %v535_v32  ;;  %v543_v39 = vrot.slane %v542_v36, 2  ;;  %v550_v40 = vrot.slane %v549_v37, 2 }
 0x214   : > { %v538_v41 = vrot.slane %v537_v38, 1  ;;  %v544_v42 = vadd.f32 %v543_v39, %v542_v36  ;;  %v551_v43 = vadd.f32 %v550_v40, %v549_v37  ;;  %v1126_v37 = vld [vmem:[%s1464_s4] sm:$0xff]  }
 0x216   : > { %v539_v44 = vadd.f32 %v538_v41, %v537_v38  ;;  %v545_v45 = vrot.slane %v544_v42, 1  ;;  %v552_v46 = vrot.slane %v551_v43, 1  ;;  %v1127_v38 = vld [vmem:[%s1464_s4 + $0x8] sm:$0xff]  }
 0x218   : > { %v546_v47 = vadd.f32 %v545_v45, %v544_v42  ;;  %v554_v48 = vpack.c.bf16 %v539_v44, %v539_v44  ;;  %v553_v49 = vadd.f32 %v552_v46, %v551_v43 }
 0x21a   : > { %v555_v50 = vpack.c.bf16 %v546_v47, %v546_v47  ;;  %v556_v51 = vpack.c.bf16 %v553_v49, %v553_v49  ;;  %v571_v52 = vunpack.c.l.b16 %v554_v48 }
 0x21c   : > { %v572_v53 = vunpack.c.l.b16 %v555_v50  ;;  %v573_v54 = vunpack.c.l.b16 %v556_v51  ;;  %v836_v51 = vld [vmem:[%s1465_s5] sm:$0x1] }
 0x21e   : > { %v575_v55 = vsel %vm574_vm8, %v572_v53, %v571_v52 }
 0x21f   : > { %v577_v56 = vsel %vm576_vm9, %v573_v54, %v575_v55 }
 0x220   : > { %v578_v57 = vpack.c.b16 %v577_v56, %v577_v56 }
 0x222   : > { %1042 = vmatmul.mubr.msk.bf16.vlgmr.msra.gmra.mrb[4].mxu1 %vm279_vm2, %v578_v57 }
 0x223   : > { %1057 = vmatprep.mubr.msk.bf16.mxu1 %vm1209_vm0, %v1208_v1  ;;  %1054 = vmatpush3.bf16.msra.mxu1 %v1123_v59 }
 0x224   : > { %1055 = vmatprep.subr.bf16.mxu1 %v1208_v1 }
 0x227   : > { %1056 = vmatpush3.bf16.msra.mxu1 %v1125_v61 }
 0x228   : > { %1067 = vmatprep.subr.bf16.mxu1 %v1208_v1 }
 0x2f5   : > { %v628_v63 = vpop.f32.mrb[4].mxu1 }
 0x2f6   : > { %v629_v0 = vadd.f32 %v975_v62, %v628_v63  ;;  %v1043_v2 = vpop.f32.mrb[5].mxu1 }
 0x2f7   : > { %v631_v3 = vpop.f32.mrb[6].mxu1 }
 0x2f8   : > { %635 = vst.msk [vmem:[#allocation2] sm:$0x7] %vm634_vm10, %v629_v0  ;;  %v1044_v4 = vpop.f32.mrb[7].mxu1 }
 0x2ff   : > { %v639_v5 = vld [vmem:[#allocation2] sm:$0xf] }
 0x300   : > { %v640_v6 = vpack.c.bf16 %v639_v5, %v639_v5 }
 0x302   : > { %1050 = vmatmul.mubr.msk.bf16.vlgmr.msra.gmra.mrb[8].mxu0 %vm279_vm2, %v640_v6  ;;  %1058 = vmatmul.mubr.msk.bf16.vlgmr.msra.gmra.mrb[8].mxu1 %vm279_vm2, %v640_v6 }
 0x303   : > { %1063 = vmatprep.mubr.msk.bf16.mxu0 %vm1209_vm0, %v1208_v1  ;;  %1071 = vmatprep.mubr.msk.bf16.mxu1 %vm1209_vm0, %v1208_v1 }
 0x304   : > { %1062 = vmatpush3.bf16.msra.mxu0 %v781_v8  ;;  %1068 = vmatpush3.bf16.msra.mxu1 %v1126_v37 }
 0x305   : > { %1069 = vmatprep.subr.bf16.mxu1 %v1208_v1 }
 0x308   : > { %1070 = vmatpush3.bf16.msra.mxu1 %v1127_v38 }
 0x3d5   : > { %v694_v9 = vpop.f32.mrb[8].mxu0  ;;  %v750_v10 = vpop.f32.mrb[8].mxu1 }
 0x3d6   : > { %v756_v11 = vsel %vm414_vm5, %v694_v9, -inf  ;;  %v1051_v12 = vpop.f32.mrb[9].mxu0  ;;  %v1059_v13 = vpop.f32.mrb[9].mxu1 }
 0x3d7   : > { %v757_v14 = vrot.slane %v756_v11, 4  ;;  %v697_v15 = vpop.f32.mrb[10].mxu0  ;;  %v753_v16 = vpop.f32.mrb[10].mxu1 }
 0x3d8   : > { %v1052_v17 = vpop.f32.mrb[11].mxu0  ;;  %v1060_v18 = vpop.f32.mrb[11].mxu1 }
 0x3d9   : > { %v758_v19 = vmax.f32 %v756_v11, %v757_v14 }
 0x3db   : > { %v759_v20 = vrot.slane %v758_v19, 2 }
 0x3dd   : > { %v760_v21 = vmax.f32 %v758_v19, %v759_v20 }
 0x3df   : > { %v761_v22 = vrot.slane %v760_v21, 1 }
 0x3e1   : > { %v762_v23 = vmax.f32 %v760_v21, %v761_v22 }
 0x3e3   : > { %v763_v24 = vsub.f32 %v694_v9, %v762_v23 }
 0x3e5   : > { %v764_v25 = vmul.f32 1.442695, %v763_v24 }
 0x3e7   : > { %1140 = vpow2.f32 %v764_v25 }
 0x3f1   : > { %v1141_v26 = vpop.eup %1140 }
 0x3f2   : > { %v766_v27 = vsel %vm414_vm5, %v1141_v26, 0.0 }
 0x3f3   : > { %v767_v28 = vrot.slane %v766_v27, 4 }
 0x3f5   : > { %v768_v29 = vadd.f32 %v767_v28, %v766_v27 }
 0x3f7   : > { %v769_v30 = vrot.slane %v768_v29, 2 }
 0x3f9   : > { %v770_v31 = vadd.f32 %v769_v30, %v768_v29 }
 0x3fb   : > { %v771_v32 = vrot.slane %v770_v31, 1 }
 0x3fd   : > { %v772_v33 = vadd.f32 %v771_v32, %v770_v31 }
 0x3ff   : > { %1142 = vrcp.f32 %v772_v33 }
 0x409   : > { %v1143_v34 = vpop.eup %1142 }
 0x40a   : > { %v774_v35 = vmul.f32 %v1143_v34, %v1141_v26 }
 0x40c   : > { %v775_v36 = vpack.c.bf16 %v774_v35, %v774_v35 }
 0x40e   : > { %1064 = vmatmul.mubr.msk.bf16.vlgmr.msra.gmra.mrb[12].mxu0 %vm478_vm6, %v775_v36 }
 0x4e1   : > { %v817_v39 = vpop.f32.mrb[12].mxu0 }
 0x4e2   : > { %v823_v40 = vmul.f32 %v817_v39, %v750_v10  ;;  %v1065_v41 = vpop.f32.mrb[13].mxu0 }
 0x4e3   : > { %v820_v42 = vpop.f32.mrb[14].mxu0 }
 0x4e4   : > { %v824_v43 = vsel %vm532_vm7, %v823_v40, 0.0  ;;  %v1066_v44 = vpop.f32.mrb[15].mxu0 }
 0x4e5   : > { %v825_v45 = vrot.slane %v824_v43, 4 }
 0x4e7   : > { %v826_v46 = vadd.f32 %v825_v45, %v824_v43 }
 0x4e9   : > { %v827_v47 = vrot.slane %v826_v46, 2 }
 0x4eb   : > { %v828_v48 = vadd.f32 %v827_v47, %v826_v46 }
 0x4ed   : > { %v829_v49 = vrot.slane %v828_v48, 1 }
 0x4ef   : > { %v830_v1 = vadd.f32 %v829_v49, %v828_v48 }
 0x4f1   : > { %v831_v50 = vpack.c.bf16 %v830_v1, %v830_v1 }
 0x4f3   : > { %1072 = vmatmul.mubr.msk.bf16.vlgmr.msra.gmra.mrb[12].mxu1 %vm279_vm2, %v831_v50 }
 0x5c6   : > { %v886_v52 = vpop.f32.mrb[12].mxu1 }
 0x5c7   : > { %v887_v53 = vadd.f32 %v886_v52, %v836_v51  ;;  %v1073_v54 = vpop.f32.mrb[13].mxu1 }
 0x5c8   : > { %v889_v55 = vpop.f32.mrb[14].mxu1 }
 0x5c9   : > { %v1074_v56 = vpop.f32.mrb[15].mxu1  ;;  %892 = vst.msk [vmem:[%s270_s14] sm:$0x1] %vm637_vm3, %v887_v53 }
 0x5ca   : > { %1157 = shalt.err (!%p1154_p3)
}
 0x5cb   : > { %s1158_s23 = scalar_lea.hbm %s1417_s18, 16  ;;  %s1162_s9 = scalar_lea.hbm %s1467_s7, 32 }
 0x5cc   : > { %p1159_p4 = scmp.ne.s32.totalorder %s1417_s18, %s1158_s23  ;;  %p1163_p9 = scmp.lt.u32.totalorder %s1417_s18, %s1467_s7 }
 0x5cd   : > { %p1164_p10 = scmp.lt.u32.totalorder %s1162_s9, %s1158_s23  ;;  %p1166_p12 = scmp.lt.u32.totalorder %s1158_s23, %s1417_s18 }
 0x5ce   : > { %p1160_p7 = pnand %p1159_p4, %p1289_p5 }
 0x5cf   : > { %p1165_p11 = por %p1164_p10, %p1163_p9 }
 0x5d0   : > { %p1161_p8 = pneg %p1160_p7 }
 0x5d1   : > { %p1167_p13 = por %p1166_p12, %p1165_p11 }
 0x5d3   : > { %p1168_p0 = pnand %p1167_p13, %p1161_p8 }
 0x5d5   : > { %1171 = shalt.err (!%p1168_p0)
}
 0x5d6   : > { %1075 = dma.vmem_to_hbm [thread:$0]  (%p1289_p5), %s1419_s15, 16, %s1417_s18, %s894_s28  }
 0x5d7 PF: > { %p1081_p1 = scmp.ge.s32.totalorder %s1206_s27, 2  ;;  %s918_s16 = sand.u32 1, %s1194_s24  }
 0x5d8   : > { %s919_s17 = scalar_lea.sflag [#allocation4], %s918_s16 }
 0x5d9   : > { %p1078_p2 = pnand %p1081_p1, %p1293_p6 }
 0x5db   : > { %1189 = dma.done.wait (!%p1078_p2), %s919_s17, 16  }
 0x5dc   : > { %1191 = vsyncadd (!%p1078_p2), %s919_s17, 4294967280  ;;  %p17_p3 = scmp.ge.s32.totalorder %s1276_s30, 4   ;;  %s1470_s24 = smov %s1198_s25 }
 0x5dd   : > { %s1471_s25 = smov %s1202_s26  ;;  %s1472_s26 = smov %s1287_s10 }
 0x5de   : > { %s1473_s27 = smov %s1276_s30  ;;  %19 = sbr.rel (!%p17_p3) target bundleno = 3 (0x3), region = 83 }
 0x5e5   :  { %923 = vsyncpa [#allocation4], 1 }
 0x5e6   :  { %925 = vsyncpa [#allocation4 + $0x1], 1 }

</bundles_post_ra>
